<compile_context>
chip_gen: v7x
topology: tpu7x:2x2x1
jax: 0.10.0
libtpu: 0.0.40
codegen_flags: <defaults>
</compile_context>

<pallas_src>
import math

import jax
import jax.numpy as jnp
from jax.experimental import pallas as pl
from jax.experimental.pallas import tpu as pltpu


def _round_up(x: int, m: int) -> int:
    return ((x + m - 1) // m) * m


def mlp_kernel(x_ref, w1t_ref, b1_ref, w2t_ref, b2_ref, o_ref):
    """Fused 2-layer MLP on one batch tile.

    x_ref:   (TB, Kp)  activations (compute dtype, e.g. bf16)
    w1t_ref: (Kp, Hp)  layer-1 weight, pre-transposed to [in, out]
    b1_ref:  (1,  Hp)  layer-1 bias (f32, lane-aligned row)
    w2t_ref: (Hp, Np)  layer-2 weight, pre-transposed to [in, out]
    b2_ref:  (1,  Np)  layer-2 bias (f32)
    o_ref:   (TB, Np)  output (f32)
    """
    x = x_ref[...]
    w2t = w2t_ref[...]

    # Layer 1: Linear + ReLU (f32 accumulation, f32 bias-add/ReLU on the VPU).
    h = jnp.dot(x, w1t_ref[...], preferred_element_type=jnp.float32)
    h = jnp.maximum(h + b1_ref[...], 0.0)

    # Layer 2: Linear + ReLU (feed MXU in the compute dtype).
    y = jnp.dot(h.astype(w2t.dtype), w2t, preferred_element_type=jnp.float32)
    y = jnp.maximum(y + b2_ref[...], 0.0)

    o_ref[...] = y.astype(o_ref.dtype)


def prepare_mlp_params(w1, b1, w2, b2, *, compute_dtype=jnp.bfloat16):
    """One-time layout work, hoisted out of the forward path.

    w1: [hidden, inp_dim], b1: [hidden]   (PyTorch nn.Linear layout)
    w2: [out_dim, hidden], b2: [out_dim]

    Transposes weights to [in, out], zero-pads every feature dim to a multiple
    of 128 lanes, casts weights to `compute_dtype`, keeps biases in f32 (they
    are added to the f32 MXU accumulator; v5e's VPU has no bf16 anyway).
    """
    hidden, inp_dim = w1.shape
    out_dim = w2.shape[0]

    kp = _round_up(inp_dim, 128)
    hp = _round_up(hidden, 128)
    np_ = _round_up(out_dim, 128)

    cdt = jnp.dtype(compute_dtype)

    w1t = jnp.zeros((kp, hp), cdt).at[:inp_dim, :hidden].set(w1.T.astype(cdt))
    w2t = jnp.zeros((hp, np_), cdt).at[:hidden, :out_dim].set(w2.T.astype(cdt))
    b1p = jnp.zeros((1, hp), jnp.float32).at[0, :hidden].set(b1.astype(jnp.float32))
    b2p = jnp.zeros((1, np_), jnp.float32).at[0, :out_dim].set(b2.astype(jnp.float32))

    return {
        "w1t": w1t, "b1": b1p, "w2t": w2t, "b2": b2p,
        "inp_dim": inp_dim, "hidden": hidden, "out_dim": out_dim,
        "kp": kp, "hp": hp, "np": np_,
        "compute_dtype": cdt,
    }


def _pick_batch_tile(batch: int, min_tile: int, max_tile: int) -> int:
    """Largest power-of-two tile minimizing padded-batch waste; prefer >=4 grid
    steps (2 per TensorCore on v7x) so megacore sharding / pipelining engage."""
    cands = [t for t in (2048, 1024, 512, 256, 128, 64, 32, 16, 8)
             if min_tile <= t <= max_tile]
    if not cands:
        cands = [min_tile]
    best_key, best_t = None, cands[-1]
    for t in cands:
        bp = _round_up(batch, t)
        waste = bp - batch
        steps = bp // t
        key = (waste, 0 if steps >= 4 else 1, -t)
        if best_key is None or key < best_key:
            best_key, best_t = key, t
    return best_t


def mlp_forward(x, params, *, block_batch=512):
    """Forward pass. `params` comes from prepare_mlp_params (hoisted layout work).

    x: [batch, inp_dim] (any float dtype; cast to the compute dtype inside).
    Returns [batch, out_dim] in float32.
    """
    batch, inp_dim = x.shape
    assert inp_dim == params["inp_dim"], "input feature dim mismatch"

    kp, hp, np_ = params["kp"], params["hp"], params["np"]
    out_dim = params["out_dim"]
    cdt = params["compute_dtype"]
    out_dtype = jnp.dtype(jnp.float32)

    # Minimum sublane tile: (8,128) for 32-bit, (16,128) for bf16/packed dtypes.
    min_sub = 8 if cdt.itemsize >= 4 else 16
    tb = _pick_batch_tile(batch, min_sub, max(block_batch, min_sub))
    bp = _round_up(batch, tb)

    # Pad/cast activations only when needed (aligned case: no extra x copy
    # beyond the dtype cast, and none at all if x is already compute dtype).
    if bp == batch and kp == inp_dim:
        x_p = x if x.dtype == cdt else x.astype(cdt)
    else:
        x_p = jnp.zeros((bp, kp), cdt).at[:batch, :inp_dim].set(x.astype(cdt))

    w_bytes = cdt.itemsize
    o_bytes = out_dtype.itemsize

    # VMEM footprint: single-buffered resident weights/biases + double-buffered
    # batch tiles + f32 intermediates, with headroom. Explicit limit so the
    # 16 MiB (v5e) / 32 MiB (v6e, v7x) scoped default never binds.
    resident = (kp * hp + hp * np_) * w_bytes + (hp + np_) * 4
    streamed = 2 * tb * kp * w_bytes + 2 * tb * np_ * o_bytes
    scratch = tb * hp * 4 + tb * np_ * 4
    vmem_limit = int(min(max(1.25 * (resident + streamed + scratch) + (4 << 20),
                             32 << 20), 128 << 20))
    # TODO(synk): if resident weights alone approach ~48 MiB (v7x has 64 MiB/TC),
    # switch to a K/N-tiled grid with a VMEM accumulator + pl.when init/finalize
    # instead of keeping both weight matrices fully resident.

    cost = pl.CostEstimate(
        flops=2 * bp * (kp * hp + hp * np_),
        transcendentals=0,
        bytes_accessed=bp * kp * w_bytes + resident + bp * np_ * o_bytes,
    )

    def resident_spec(shape):
        # Block index never changes across the grid -> single buffer is enough.
        return pl.BlockSpec(shape, lambda i: (0, 0), pipeline_mode=pl.Buffered(1))

    grid = (bp // tb,)

    out_p = pl.pallas_call(
        mlp_kernel,
        out_shape=jax.ShapeDtypeStruct((bp, np_), out_dtype),
        grid=grid,
        in_specs=[
            pl.BlockSpec((tb, kp), lambda i: (i, 0)),   # x: tiled over batch
            resident_spec((kp, hp)),                    # W1^T: resident
            resident_spec((1, hp)),                     # b1:   resident
            resident_spec((hp, np_)),                   # W2^T: resident
            resident_spec((1, np_)),                    # b2:   resident
        ],
        out_specs=pl.BlockSpec((tb, np_), lambda i: (i, 0)),
        compiler_params=pltpu.CompilerParams(
            dimension_semantics=("parallel",),
            vmem_limit_bytes=vmem_limit,
        ),
        cost_estimate=cost,
    )(x_p, params["w1t"], params["b1"], params["w2t"], params["b2"])

    if bp == batch and np_ == out_dim:
        return out_p
    return out_p[:batch, :out_dim]


def init_linear_params(key, in_features, out_features):
    """Deterministic init mimicking torch.nn.Linear default (uniform +-1/sqrt(fan_in))."""
    kw, kb = jax.random.split(key)
    bound = 1.0 / math.sqrt(in_features)
    w = jax.random.uniform(
        kw, (out_features, in_features), jnp.float32, minval=-bound, maxval=bound
    )
    b = jax.random.uniform(
        kb, (out_features,), jnp.float32, minval=-bound, maxval=bound
    )
    return w, b


def mlp_reference(x, w1, b1, w2, b2):
    """Plain-JAX reference of the PyTorch forward pass."""
    h = jnp.maximum(x @ w1.T + b1, 0.0)
    return jnp.maximum(h @ w2.T + b2, 0.0)


if __name__ == "__main__":
    batch = 16
    inp_dim = 32
    out_dim = 32

    key = jax.random.PRNGKey(0)
    kx, k1, k2 = jax.random.split(key, 3)

    x = jax.random.normal(kx, (batch, inp_dim), jnp.float32)
    # layers=[] -> hidden width == inp_dim
    w1, b1 = init_linear_params(k1, inp_dim, inp_dim)   # hidden Linear
    w2, b2 = init_linear_params(k2, inp_dim, out_dim)   # output Linear

    ref = mlp_reference(x, w1, b1, w2, b2)

    # f32 path: exact-tolerance check vs the reference.
    params_f32 = prepare_mlp_params(w1, b1, w2, b2, compute_dtype=jnp.float32)
    out_f32 = jax.block_until_ready(mlp_forward(x, params_f32))
    assert out_f32.shape == (batch, out_dim)
    assert jnp.allclose(out_f32, ref, atol=1e-5, rtol=1e-5), "f32 mismatch vs reference"

    # bf16 path (production default): half the DMA bytes / VMEM residency,
    # f32 accumulation -> loose tolerance vs the f32 reference.
    params_bf16 = prepare_mlp_params(w1, b1, w2, b2)  # compute_dtype=bf16
    out_bf16 = jax.block_until_ready(mlp_forward(x, params_bf16))
    assert out_bf16.shape == (batch, out_dim)
    assert jnp.allclose(out_bf16, ref, atol=5e-2, rtol=5e-2), "bf16 mismatch vs reference"

    print("KERNEL_OK")
</pallas_src>

<mosaic_0001>
module attributes {stable_mosaic.version = 11 : i64} {
  func.func @mlp_kernel(%arg0: i32, %arg1: memref<16x128xf32, #tpu.memory_space<vmem>>, %arg2: memref<128x128xf32, #tpu.memory_space<vmem>>, %arg3: memref<1x128xf32, #tpu.memory_space<vmem>>, %arg4: memref<128x128xf32, #tpu.memory_space<vmem>>, %arg5: memref<1x128xf32, #tpu.memory_space<vmem>>, %arg6: memref<16x128xf32, #tpu.memory_space<vmem>>) attributes {dimension_semantics = [#tpu.dimension_semantics<parallel>], iteration_bounds = array<i64: 1>, scalar_prefetch = 0 : i64, scratch_operands = 0 : i64, tpu.core_type = #tpu.core_type<tc>, window_params = [{transform_indices = @transform_0, window_bounds = array<i64: 16, 128>}, {pipeline_mode = #tpu.pipeline_mode<synchronous>, transform_indices = @transform_1, window_bounds = array<i64: 128, 128>}, {pipeline_mode = #tpu.pipeline_mode<synchronous>, transform_indices = @transform_2, window_bounds = array<i64: 1, 128>}, {pipeline_mode = #tpu.pipeline_mode<synchronous>, transform_indices = @transform_3, window_bounds = array<i64: 128, 128>}, {pipeline_mode = #tpu.pipeline_mode<synchronous>, transform_indices = @transform_4, window_bounds = array<i64: 1, 128>}, {transform_indices = @transform_5, window_bounds = array<i64: 16, 128>}]} {
    %c0 = arith.constant 0 : index
    %c0_0 = arith.constant 0 : index
    %0 = vector.load %arg1[%c0, %c0_0] : memref<16x128xf32, #tpu.memory_space<vmem>>, vector<16x128xf32>
    %c0_1 = arith.constant 0 : index
    %c0_2 = arith.constant 0 : index
    %1 = vector.load %arg4[%c0_1, %c0_2] : memref<128x128xf32, #tpu.memory_space<vmem>>, vector<128x128xf32>
    %c0_3 = arith.constant 0 : index
    %c0_4 = arith.constant 0 : index
    %2 = vector.load %arg2[%c0_3, %c0_4] : memref<128x128xf32, #tpu.memory_space<vmem>>, vector<128x128xf32>
    %cst = arith.constant dense<0.000000e+00> : vector<16x128xf32>
    %3 = tpu.matmul %0, %2, %cst {dimension_numbers = #tpu.dot_dimension_numbers<[1], [0], [0], [1], [0, 0, 1, 1], [], []>} : vector<16x128xf32>, vector<128x128xf32>, vector<16x128xf32> -> vector<16x128xf32>
    %c0_5 = arith.constant 0 : index
    %c0_6 = arith.constant 0 : index
    %4 = vector.load %arg3[%c0_5, %c0_6] : memref<1x128xf32, #tpu.memory_space<vmem>>, vector<1x128xf32>
    %5 = vector.broadcast %4 : vector<1x128xf32> to vector<16x128xf32>
    %6 = arith.addf %3, %5 : vector<16x128xf32>
    %cst_7 = arith.constant 0.000000e+00 : f32
    %7 = vector.broadcast %cst_7 : f32 to vector<16x128xf32>
    %8 = arith.maximumf %6, %7 : vector<16x128xf32>
    %cst_8 = arith.constant dense<0.000000e+00> : vector<16x128xf32>
    %9 = tpu.matmul %8, %1, %cst_8 {dimension_numbers = #tpu.dot_dimension_numbers<[1], [0], [0], [1], [0, 0, 1, 1], [], []>} : vector<16x128xf32>, vector<128x128xf32>, vector<16x128xf32> -> vector<16x128xf32>
    %c0_9 = arith.constant 0 : index
    %c0_10 = arith.constant 0 : index
    %10 = vector.load %arg5[%c0_9, %c0_10] : memref<1x128xf32, #tpu.memory_space<vmem>>, vector<1x128xf32>
    %11 = vector.broadcast %10 : vector<1x128xf32> to vector<16x128xf32>
    %12 = arith.addf %9, %11 : vector<16x128xf32>
    %cst_11 = arith.constant 0.000000e+00 : f32
    %13 = vector.broadcast %cst_11 : f32 to vector<16x128xf32>
    %14 = arith.maximumf %12, %13 : vector<16x128xf32>
    %c0_12 = arith.constant 0 : index
    %c0_13 = arith.constant 0 : index
    %15 = vector.load %arg6[%c0_12, %c0_13] : memref<16x128xf32, #tpu.memory_space<vmem>>, vector<16x128xf32>
    tpu.vector_store %arg6[%c0_12, %c0_13], %14 {strides = array<i32>} : memref<16x128xf32, #tpu.memory_space<vmem>>, vector<16x128xf32>,
    return
  }
  func.func @transform_0(%arg0: i32) -> (i32, i32) {
    %c0_i32 = arith.constant 0 : i32
    %c0_i32_0 = arith.constant 0 : i32
    return %arg0, %c0_i32 : i32, i32
  }
  func.func @transform_1(%arg0: i32) -> (i32, i32) {
    %c0_i32 = arith.constant 0 : i32
    %c0_i32_0 = arith.constant 0 : i32
    %c0_i32_1 = arith.constant 0 : i32
    return %c0_i32, %c0_i32_0 : i32, i32
  }
  func.func @transform_2(%arg0: i32) -> (i32, i32) {
    %c0_i32 = arith.constant 0 : i32
    %c0_i32_0 = arith.constant 0 : i32
    %c0_i32_1 = arith.constant 0 : i32
    return %c0_i32, %c0_i32_0 : i32, i32
  }
  func.func @transform_3(%arg0: i32) -> (i32, i32) {
    %c0_i32 = arith.constant 0 : i32
    %c0_i32_0 = arith.constant 0 : i32
    %c0_i32_1 = arith.constant 0 : i32
    return %c0_i32, %c0_i32_0 : i32, i32
  }
  func.func @transform_4(%arg0: i32) -> (i32, i32) {
    %c0_i32 = arith.constant 0 : i32
    %c0_i32_0 = arith.constant 0 : i32
    %c0_i32_1 = arith.constant 0 : i32
    return %c0_i32, %c0_i32_0 : i32, i32
  }
  func.func @transform_5(%arg0: i32) -> (i32, i32) {
    %c0_i32 = arith.constant 0 : i32
    %c0_i32_0 = arith.constant 0 : i32
    return %arg0, %c0_i32 : i32, i32
  }
}

</mosaic_0001>

<bundles_post_ra>
// kernel: tpu_custom_call.1
= control target key start
LH: loop header
LB: loop body
LE: loop exit
PB: predicated region body
PF: predicated region fallthrough
CT: control target
= control target key end

     0   :  { %10 = vsyncpa [#allocation3], 0  ;;  %s665_s0 = inlined_call_operand.hbm [shape: f32[16,128], index: 0, kind: input, shape index: {}]   ;;  %s666_s1 = inlined_call_operand.hbm [shape: f32[128,128], index: 1, kind: input, shape index: {}]   ;;  %s667_s2 = inlined_call_operand.vmem [shape: f32[1,128], index: 2, kind: input, shape index: {}]   ;;  %s668_s3 = inlined_call_operand.hbm [shape: f32[128,128], index: 3, kind: input, shape index: {}]   ;;  %s669_s4 = inlined_call_operand.vmem [shape: f32[1,128], index: 4, kind: input, shape index: {}]   ;;  %s670_s5 = inlined_call_operand.hbm [shape: f32[16,128], index: 5, kind: output, shape index: {}]  }
   0x1   :  { %11 = vsyncpa [#allocation6], 0 }
   0x2   :  { %12 = vsyncpa [#allocation4], 0  ;;  %s556_s18 = smov [#allocation5]   ;;  %s557_s20 = smov [#allocation2]  }
   0x3   :  { %s30_s19 = sshll.u32 %s556_s18, 4  ;;  %s18_s21 = sshll.u32 %s557_s20, 4  ;;  %s31_s19 = int_to_ptr.vmem [resolvable:$true] %s30_s19  ;;  %s592_s21 = int_to_ptr.vmem [resolvable:$true] %s18_s21 }
   0x4   :  { %s462_s24 = scalar_lea.hbm %s666_s1, 2048 }
   0x5   :  { %p463_p0 = scmp.ne.s32.totalorder %s666_s1, %s462_s24  ;;  %p466_p1 = scmp.lt.u32.totalorder %s462_s24, %s666_s1 }
   0x7   :  { %p468_p2 = pnand %p466_p1, %p463_p0 }
   0x9   :  { %471 = shalt.err (!%p468_p2)
}
   0xa   :  { %s472_s29 = scalar_lea.vmem %s31_s19, 2048  ;;  %p477_p4 = scmp.lt.s32.totalorder %s31_s19, %s31_s19 }
   0xb   :  { %p473_p3 = scmp.ne.s32.totalorder %s31_s19, %s472_s29  ;;  %p478_p5 = scmp.lt.s32.totalorder %s472_s29, %s472_s29 }
   0xd   :  { %p479_p6 = por %p478_p5, %p477_p4 }
   0xf   :  { %p480_p7 = pnand %p479_p6, %p473_p3 }
  0x11   :  { %483 = shalt.err (!%p480_p7)
}
  0x12   :  { %s558_s30 = smov 128   ;;  %s559_s6 = smov 8  }
  0x13   :  { %36 = dma.hbm_to_vmem [thread:$0]  %s666_s1, 2048, %s31_s19, [#allocation6], %s558_s30, %s558_s30, %s559_s6  }
  0x14   :  { %s484_s11 = scalar_lea.hbm %s665_s0, 256 }
  0x15   :  { %p485_p8 = scmp.ne.s32.totalorder %s665_s0, %s484_s11  ;;  %p488_p9 = scmp.lt.u32.totalorder %s484_s11, %s665_s0 }
  0x17   :  { %p490_p10 = pnand %p488_p9, %p485_p8 }
  0x19   :  { %493 = shalt.err (!%p490_p10)
}
  0x1a   :  { %s494_s16 = scalar_lea.vmem %s592_s21, 256  ;;  %p499_p12 = scmp.lt.s32.totalorder %s592_s21, %s592_s21 }
  0x1b   :  { %p495_p11 = scmp.ne.s32.totalorder %s592_s21, %s494_s16  ;;  %p500_p13 = scmp.lt.s32.totalorder %s494_s16, %s494_s16 }
  0x1d   :  { %p501_p0 = por %p500_p13, %p499_p12 }
  0x1f   :  { %p502_p1 = pnand %p501_p0, %p495_p11 }
  0x21   :  { %505 = shalt.err (!%p502_p1)
}
  0x22   :  { %24 = dma.hbm_to_vmem [thread:$0]  %s665_s0, 256, %s592_s21, [#allocation3], %s558_s30, %s558_s30, %s559_s6  }
  0x23   :  { %s560_s18 = smov [#allocation7]   ;;  %s506_s23 = scalar_lea.hbm %s668_s3, 2048 }
  0x24   :  { %s44_s19 = sshll.u32 %s560_s18, 4  ;;  %p507_p2 = scmp.ne.s32.totalorder %s668_s3, %s506_s23  ;;  %s45_s19 = int_to_ptr.vmem [resolvable:$true] %s44_s19 }
  0x25   :  { %p510_p3 = scmp.lt.u32.totalorder %s506_s23, %s668_s3 }
  0x27   :  { %p512_p4 = pnand %p510_p3, %p507_p2 }
  0x29   :  { %515 = shalt.err (!%p512_p4)
}
  0x2a   :  { %s516_s28 = scalar_lea.vmem %s45_s19, 2048  ;;  %p521_p6 = scmp.lt.s32.totalorder %s45_s19, %s45_s19 }
  0x2b   :  { %p517_p5 = scmp.ne.s32.totalorder %s45_s19, %s516_s28  ;;  %p522_p7 = scmp.lt.s32.totalorder %s516_s28, %s516_s28 }
  0x2d   :  { %p523_p8 = por %p522_p7, %p521_p6 }
  0x2f   :  { %p524_p9 = pnand %p523_p8, %p517_p5 }
  0x31   :  { %527 = shalt.err (!%p524_p9)
}
  0x32   :  { %50 = dma.hbm_to_vmem [thread:$0]  %s668_s3, 2048, %s45_s19, [#allocation6], %s558_s30, %s558_s30, %s559_s6  }
  0x33   :  { %550 = dma.done.wait [#allocation3], 256  }
  0x34   :  { %551 = vsyncadd [#allocation3], 4294967040 }
  0x35   :  { %552 = dma.done.wait [#allocation6], 4096  }
  0x36   :  { %553 = vsyncadd [#allocation6], 4294963200  ;;  %v80_v0 = vld [vmem:[#allocation5] sm:$0xff]  ;;  %v81_v1 = vld [vmem:[#allocation5 + $0x8] sm:$0xff]  ;;  %s561_s9 = smov [#allocation8]  }
  0x37   :  { %v82_v2 = vld [vmem:[#allocation5 + $0x10] sm:$0xff]  ;;  %v392_v3 = vpack.c.bf16 %v81_v1, %v80_v0  ;;  %v83_v4 = vld [vmem:[#allocation5 + $0x18] sm:$0xff]  ;;  %v84_v6 = vld [vmem:[#allocation5 + $0x20] sm:$0xff]  ;;  %s271_s10 = sshll.u32 %s561_s9, 4  ;;  %s272_s10 = int_to_ptr.vmem [resolvable:$true] %s271_s10 }
  0x38   :  { %v396_v5 = vpack.c.bf16 %v83_v4, %v82_v2  ;;  %v85_v7 = vld [vmem:[#allocation5 + $0x28] sm:$0xff]  ;;  %v86_v9 = vld [vmem:[#allocation5 + $0x30] sm:$0xff]  ;;  %v87_v10 = vld [vmem:[#allocation5 + $0x38] sm:$0xff]  ;;  %p533_p11 = scmp.lt.s32.totalorder %s272_s10, %s272_s10 }
  0x39   :  { %393 = vmatprep.subr.bf16.mxu0 %v392_v3  ;;  %v400_v8 = vpack.c.bf16 %v85_v7, %v84_v6  ;;  %v62_v11 = vld [vmem:[#allocation2] sm:$0xff]  ;;  %v64_v12 = vld [vmem:[#allocation7] sm:$0xff]  ;;  %v65_v13 = vld [vmem:[#allocation7 + $0x8] sm:$0xff]  ;;  %v404_v20 = vpack.c.bf16 %v87_v10, %v86_v9 }
  0x3a   :  { %395 = vmatpush3.bf16.msra.mxu0 %v392_v3  ;;  %354 = vmatprep.mubr.f32.mxu0 %v62_v11  ;;  %v66_v14 = vld [vmem:[#allocation7 + $0x10] sm:$0xff]  ;;  %v424_v15 = vpack.c.bf16 %v65_v13, %v64_v12  ;;  %v67_v16 = vld [vmem:[#allocation7 + $0x18] sm:$0xff]  ;;  %v68_v18 = vld [vmem:[#allocation7 + $0x20] sm:$0xff] }
  0x3b   :  { %397 = vmatprep.subr.bf16.mxu0 %v396_v5  ;;  %v428_v17 = vpack.c.bf16 %v67_v16, %v66_v14  ;;  %v69_v19 = vld [vmem:[#allocation7 + $0x28] sm:$0xff]  ;;  %v88_v21 = vld [vmem:[#allocation5 + $0x40] sm:$0xff]  ;;  %v70_v24 = vld [vmem:[#allocation7 + $0x30] sm:$0xff] }
  0x3c   :  { %425 = vmatprep.subr.bf16.mxu1 %v424_v15  ;;  %v89_v22 = vld [vmem:[#allocation5 + $0x48] sm:$0xff]  ;;  %v432_v23 = vpack.c.bf16 %v69_v19, %v68_v18  ;;  %v71_v25 = vld [vmem:[#allocation7 + $0x38] sm:$0xff]  ;;  %v90_v27 = vld [vmem:[#allocation5 + $0x50] sm:$0xff] }
  0x3d   :  { %427 = vmatpush3.bf16.msra.mxu1 %v424_v15  ;;  %v408_v26 = vpack.c.bf16 %v89_v22, %v88_v21  ;;  %v91_v28 = vld [vmem:[#allocation5 + $0x58] sm:$0xff]  ;;  %v436_v29 = vpack.c.bf16 %v71_v25, %v70_v24  ;;  %v72_v30 = vld [vmem:[#allocation7 + $0x40] sm:$0xff]  ;;  %v73_v31 = vld [vmem:[#allocation7 + $0x48] sm:$0xff] }
  0x3e   :  { %399 = vmatpush3.bf16.msra.mxu0 %v396_v5  ;;  %429 = vmatprep.subr.bf16.mxu1 %v428_v17  ;;  %v412_v32 = vpack.c.bf16 %v91_v28, %v90_v27  ;;  %v92_v33 = vld [vmem:[#allocation5 + $0x60] sm:$0xff]  ;;  %v93_v34 = vld [vmem:[#allocation5 + $0x68] sm:$0xff]  ;;  %v440_v35 = vpack.c.bf16 %v73_v31, %v72_v30  ;;  %v74_v36 = vld [vmem:[#allocation7 + $0x50] sm:$0xff] }
  0x3f   :  { %401 = vmatprep.subr.bf16.mxu0 %v400_v8  ;;  %v75_v37 = vld [vmem:[#allocation7 + $0x58] sm:$0xff]  ;;  %v416_v38 = vpack.c.bf16 %v93_v34, %v92_v33  ;;  %v94_v39 = vld [vmem:[#allocation5 + $0x70] sm:$0xff]  ;;  %v76_v42 = vld [vmem:[#allocation7 + $0x60] sm:$0xff] }
  0x40   :  { %v95_v40 = vld [vmem:[#allocation5 + $0x78] sm:$0xff]  ;;  %v444_v41 = vpack.c.bf16 %v75_v37, %v74_v36  ;;  %v77_v43 = vld [vmem:[#allocation7 + $0x68] sm:$0xff]  ;;  %v78_v47 = vld [vmem:[#allocation7 + $0x70] sm:$0xff] }
  0x41   :  { %431 = vmatpush3.bf16.msra.mxu1 %v428_v17  ;;  %v420_v44 = vpack.c.bf16 %v95_v40, %v94_v39  ;;  %v448_v45 = vpack.c.bf16 %v77_v43, %v76_v42  ;;  %v63_v46 = vld [vmem:[#allocation2 + $0x8] sm:$0xff]  ;;  %v284_v50 = vld [vmem:[%s667_s2] ss:$0 sm:$0xff]  ;;  %s528_s2 = scalar_lea.vmem %s272_s10, 256 }
  0x42   :  { %403 = vmatpush3.bf16.msra.mxu0 %v400_v8  ;;  %433 = vmatprep.subr.bf16.mxu1 %v432_v23  ;;  %v79_v48 = vld [vmem:[#allocation7 + $0x78] sm:$0xff]  ;;  %v285_v57 = vld [vmem:[%s669_s4] ss:$0 sm:$0xff]  ;;  %p529_p10 = scmp.ne.s32.totalorder %s272_s10, %s528_s2  ;;  %p534_p12 = scmp.lt.s32.totalorder %s528_s2, %s528_s2 }
  0x43   :  { %405 = vmatprep.subr.bf16.mxu0 %v404_v20  ;;  %v452_v49 = vpack.c.bf16 %v79_v48, %v78_v47 }
  0x44   :  { %p535_p13 = por %p534_p12, %p533_p11 }
  0x45   :  { %435 = vmatpush3.bf16.msra.mxu1 %v432_v23 }
  0x46   :  { %407 = vmatpush3.bf16.msra.mxu0 %v404_v20  ;;  %437 = vmatprep.subr.bf16.mxu1 %v436_v29  ;;  %p536_p0 = pnand %p535_p13, %p529_p10 }
  0x47   :  { %409 = vmatprep.subr.bf16.mxu0 %v408_v26 }
  0x49   :  { %439 = vmatpush3.bf16.msra.mxu1 %v436_v29 }
  0x4a   :  { %411 = vmatpush3.bf16.msra.mxu0 %v408_v26  ;;  %441 = vmatprep.subr.bf16.mxu1 %v440_v35 }
  0x4b   :  { %413 = vmatprep.subr.bf16.mxu0 %v412_v32 }
  0x4d   :  { %443 = vmatpush3.bf16.msra.mxu1 %v440_v35 }
  0x4e   :  { %415 = vmatpush3.bf16.msra.mxu0 %v412_v32  ;;  %445 = vmatprep.subr.bf16.mxu1 %v444_v41 }
  0x4f   :  { %417 = vmatprep.subr.bf16.mxu0 %v416_v38 }
  0x51   :  { %447 = vmatpush3.bf16.msra.mxu1 %v444_v41 }
  0x52   :  { %419 = vmatpush3.bf16.msra.mxu0 %v416_v38  ;;  %449 = vmatprep.subr.bf16.mxu1 %v448_v45 }
  0x53   :  { %421 = vmatprep.subr.bf16.mxu0 %v420_v44 }
  0x55   :  { %451 = vmatpush3.bf16.msra.mxu1 %v448_v45 }
  0x56   :  { %423 = vmatpush3.bf16.msra.mxu0 %v420_v44  ;;  %453 = vmatprep.subr.bf16.mxu1 %v452_v49 }
  0x59   :  { %355 = vmatmul.mubr.f32.vlgmr.msra.gmra.mrb[0].mxu0 %v63_v46  ;;  %455 = vmatpush3.bf16.msra.mxu1 %v452_v49 }
 0x12c   :  { %v356_v51 = vpop.f32.mrb[0].mxu0 }
 0x12d   :  { %v175_v52 = vadd.f32 %v356_v51, %v284_v50  ;;  %v169_v53 = vpop.f32.mrb[1].mxu0 }
 0x12e   :  { %v170_v54 = vadd.f32 %v284_v50, %v169_v53 }
 0x12f   :  { %v179_v56 = vmax.f32 %v175_v52, 0.0 }
 0x130   :  { %v178_v55 = vmax.f32 %v170_v54, 0.0 }
 0x132   :  { %389 = vmatprep.mubr.f32.mxu1 %v178_v55 }
 0x133   :  { %390 = vmatmul.mubr.f32.vlgmr.msra.gmra.mrb[0].mxu1 %v179_v56 }
 0x206   :  { %v391_v58 = vpop.f32.mrb[0].mxu1 }
 0x207   :  { %v259_v59 = vadd.f32 %v391_v58, %v285_v57  ;;  %v253_v60 = vpop.f32.mrb[1].mxu1 }
 0x208   :  { %v254_v61 = vadd.f32 %v285_v57, %v253_v60 }
 0x209   :  { %v263_v62 = vmax.f32 %v259_v59, 0.0 }
 0x20a   :  { %v262_v63 = vmax.f32 %v254_v61, 0.0 }
 0x20b   :  { %265 = vst [vmem:[#allocation8 + $0x8] sm:$0xff] %v263_v62 }
 0x20c   :  { %264 = vst [vmem:[#allocation8] sm:$0xff] %v262_v63 }
 0x20d   :  { %539 = shalt.err (!%p536_p0)
}
 0x20e   :  { %s540_s12 = scalar_lea.hbm %s670_s5, 256 }
 0x20f   :  { %p541_p1 = scmp.ne.s32.totalorder %s670_s5, %s540_s12  ;;  %p544_p2 = scmp.lt.u32.totalorder %s540_s12, %s670_s5 }
 0x211   :  { %p546_p3 = pnand %p544_p2, %p541_p1 }
 0x213   :  { %549 = shalt.err (!%p546_p3)
}
 0x214   :  { %277 = dma.vmem_to_hbm [thread:$0]  %s272_s10, 256, %s670_s5, [#allocation4], %s558_s30, %s558_s30, %s559_s6  }
 0x215   :  { %554 = dma.done.wait [#allocation4], 256  }
 0x216   :  { %555 = vsyncadd [#allocation4], 4294967040 }
 0x217   :  { %281 = vsyncpa [#allocation3], 1 }
 0x218   :  { %282 = vsyncpa [#allocation6], 1 }
 0x219   :  { %283 = vsyncpa [#allocation4], 1 }

</bundles_post_ra>
